<compile_context>
chip_gen: v5e
topology: v5e:2x2
jax: 0.10.0
libtpu: 0.0.40
codegen_flags: <defaults>
</compile_context>

<pallas_src>
import jax
import jax.numpy as jnp
from jax.experimental import pallas as pl
from jax.experimental.pallas import tpu as pltpu

LANE = 128
SUBLANE = 8
TARGET_BLOCK_BYTES = 2 * 1024 * 1024  # ~2 MiB blocks: roofline-friendly, VMEM-safe


def residual_kernel(x_ref, w_ref, b_ref, o_ref):
    # x_ref / o_ref: (C, rows_tile, 128) VMEM tiles (batch dim squeezed away)
    # w_ref: (C, C) SMEM 1x1-conv weight (out_ch, in_ch) -> scalar reads
    # b_ref: (C,)   SMEM bias                            -> scalar reads
    C = x_ref.shape[0]
    f32 = jnp.float32
    for o in range(C):                       # static unroll: C is tiny
        # residual + bias on a fully dense (rows_tile, 128) slab
        acc = x_ref[o].astype(f32) + b_ref[o]
        for c in range(C):                   # whole-slab VPU FMAs, no MXU push/pop
            acc = acc + w_ref[o, c] * x_ref[c].astype(f32)
        o_ref[o] = acc.astype(o_ref.dtype)


def _choose_rows_tile(rows, C, itemsize, n_batch):
    """Pick rows_tile (multiple of 8, or full extent) so that the block is
    ~TARGET_BLOCK_BYTES and the grid has >=2 steps for the v7x 2-TC split."""
    target_rows = max(SUBLANE, TARGET_BLOCK_BYTES // (C * LANE * itemsize))
    rt = min(rows, target_rows)
    if rt < rows:
        rt = max(SUBLANE, (rt // SUBLANE) * SUBLANE)
    elif n_batch == 1 and rows >= 2 * SUBLANE:
        # single image: split the spatial axis so both TensorCores get work
        rt = pl.cdiv(pl.cdiv(rows, 2), SUBLANE) * SUBLANE
    return rt


@jax.jit
def residual_forward(x_nchw, w, b):
    """x_nchw: (N, C, H, W); w: (C_out=C, C_in=C); b: (C,)."""
    N, C, H, W = x_nchw.shape
    S = H * W

    x3 = x_nchw.reshape(N, C, S)              # free reshape, no transpose
    S_pad = pl.cdiv(S, LANE) * LANE
    if S_pad != S:
        # TODO(synk): mask the ragged lane tail in-kernel instead of padding.
        x3 = jnp.pad(x3, ((0, 0), (0, 0), (0, S_pad - S)))
    rows = S_pad // LANE
    x4 = x3.reshape(N, C, rows, LANE)         # metadata-only for contiguous NCHW

    rt = _choose_rows_tile(rows, C, x4.dtype.itemsize, N)
    grid = (N, pl.cdiv(rows, rt))             # ragged last tile handled by Pallas

    out4 = pl.pallas_call(
        residual_kernel,
        out_shape=jax.ShapeDtypeStruct((N, C, rows, LANE), x4.dtype),
        grid=grid,
        in_specs=[
            pl.BlockSpec((None, C, rt, LANE), lambda n, r: (n, 0, r, 0)),  # x tile
            pl.BlockSpec(memory_space=pltpu.MemorySpace.SMEM),             # weight (C,C)
            pl.BlockSpec(memory_space=pltpu.MemorySpace.SMEM),             # bias   (C,)
        ],
        out_specs=pl.BlockSpec((None, C, rt, LANE), lambda n, r: (n, 0, r, 0)),
        compiler_params=pltpu.CompilerParams(
            dimension_semantics=("parallel", "parallel"),
            # ~2 MiB blocks x 2 buffers x (in + out) ~ 8 MiB in flight:
            # comfortably within 32 MiB on every generation (v7x: 64 MiB VMEM).
            vmem_limit_bytes=32 * 1024 * 1024,
        ),
    )(x4, w, b)

    out3 = out4.reshape(N, C, S_pad)
    if S_pad != S:
        out3 = out3[:, :, :S]
    return out3.reshape(N, C, H, W)


if __name__ == "__main__":
    key = jax.random.PRNGKey(0)
    kx, kw, kb = jax.random.split(key, 3)

    N, C, H, W = 2, 4, 16, 16
    x = jax.random.normal(kx, (N, C, H, W), dtype=jnp.float32)
    # deterministic synthetic parameters for the wrapped fn (1x1 conv)
    w = jax.random.normal(kw, (C, C), dtype=jnp.float32) * 0.1
    b = jax.random.normal(kb, (C,), dtype=jnp.float32) * 0.1

    out = jax.block_until_ready(residual_forward(x, w, b))

    # reference in plain JAX: fn(x) + x with fn = 1x1 conv
    ref = jnp.einsum("oc,nchw->nohw", w, x) + b[None, :, None, None] + x
    assert out.shape == (N, C, H, W)
    assert jnp.allclose(out, ref, atol=1e-5, rtol=1e-5)

    print("KERNEL_OK")
</pallas_src>

<mosaic_0001>
module attributes {stable_mosaic.version = 11 : i64} {
  func.func @residual_kernel(%arg0: i32, %arg1: i32, %arg2: memref<1x4x2x128xf32, #tpu.memory_space<vmem>>, %arg3: memref<4x4xf32, #tpu.memory_space<smem>>, %arg4: memref<4xf32, #tpu.memory_space<smem>>, %arg5: memref<1x4x2x128xf32, #tpu.memory_space<vmem>>) attributes {dimension_semantics = [#tpu.dimension_semantics<parallel>, #tpu.dimension_semantics<parallel>], iteration_bounds = array<i64: 2, 1>, scalar_prefetch = 0 : i64, scratch_operands = 0 : i64, tpu.core_type = #tpu.core_type<tc>, window_params = [{transform_indices = @transform_0, window_bounds = array<i64: 1, 4, 2, 128>}, {transform_indices = @transform_1, window_bounds = array<i64: 4, 4>}, {transform_indices = @transform_2, window_bounds = array<i64: 4>}, {transform_indices = @transform_3, window_bounds = array<i64: 1, 4, 2, 128>}]} {
    %c0 = arith.constant 0 : index
    %c0_0 = arith.constant 0 : index
    %c0_1 = arith.constant 0 : index
    %c0_2 = arith.constant 0 : index
    %0 = vector.load %arg2[%c0, %c0_0, %c0_1, %c0_2] : memref<1x4x2x128xf32, #tpu.memory_space<vmem>>, vector<1x1x2x128xf32>
    %1 = vector.shape_cast %0 : vector<1x1x2x128xf32> to vector<2x128xf32>
    %c0_3 = arith.constant 0 : index
    %2 = memref.load %arg4[%c0_3] : memref<4xf32, #tpu.memory_space<smem>>
    %3 = vector.broadcast %2 : f32 to vector<2x128xf32>
    %4 = arith.addf %1, %3 : vector<2x128xf32>
    %c0_4 = arith.constant 0 : index
    %c0_5 = arith.constant 0 : index
    %5 = memref.load %arg3[%c0_4, %c0_5] : memref<4x4xf32, #tpu.memory_space<smem>>
    %c0_6 = arith.constant 0 : index
    %c0_7 = arith.constant 0 : index
    %c0_8 = arith.constant 0 : index
    %c0_9 = arith.constant 0 : index
    %6 = vector.load %arg2[%c0_6, %c0_7, %c0_8, %c0_9] : memref<1x4x2x128xf32, #tpu.memory_space<vmem>>, vector<1x1x2x128xf32>
    %7 = vector.shape_cast %6 : vector<1x1x2x128xf32> to vector<2x128xf32>
    %8 = vector.broadcast %5 : f32 to vector<2x128xf32>
    %9 = arith.mulf %8, %7 : vector<2x128xf32>
    %10 = arith.addf %4, %9 : vector<2x128xf32>
    %c0_10 = arith.constant 0 : index
    %c1 = arith.constant 1 : index
    %11 = memref.load %arg3[%c0_10, %c1] : memref<4x4xf32, #tpu.memory_space<smem>>
    %c0_11 = arith.constant 0 : index
    %c1_12 = arith.constant 1 : index
    %c0_13 = arith.constant 0 : index
    %c0_14 = arith.constant 0 : index
    %12 = vector.load %arg2[%c0_11, %c1_12, %c0_13, %c0_14] : memref<1x4x2x128xf32, #tpu.memory_space<vmem>>, vector<1x1x2x128xf32>
    %13 = vector.shape_cast %12 : vector<1x1x2x128xf32> to vector<2x128xf32>
    %14 = vector.broadcast %11 : f32 to vector<2x128xf32>
    %15 = arith.mulf %14, %13 : vector<2x128xf32>
    %16 = arith.addf %10, %15 : vector<2x128xf32>
    %c0_15 = arith.constant 0 : index
    %c2 = arith.constant 2 : index
    %17 = memref.load %arg3[%c0_15, %c2] : memref<4x4xf32, #tpu.memory_space<smem>>
    %c0_16 = arith.constant 0 : index
    %c2_17 = arith.constant 2 : index
    %c0_18 = arith.constant 0 : index
    %c0_19 = arith.constant 0 : index
    %18 = vector.load %arg2[%c0_16, %c2_17, %c0_18, %c0_19] : memref<1x4x2x128xf32, #tpu.memory_space<vmem>>, vector<1x1x2x128xf32>
    %19 = vector.shape_cast %18 : vector<1x1x2x128xf32> to vector<2x128xf32>
    %20 = vector.broadcast %17 : f32 to vector<2x128xf32>
    %21 = arith.mulf %20, %19 : vector<2x128xf32>
    %22 = arith.addf %16, %21 : vector<2x128xf32>
    %c0_20 = arith.constant 0 : index
    %c3 = arith.constant 3 : index
    %23 = memref.load %arg3[%c0_20, %c3] : memref<4x4xf32, #tpu.memory_space<smem>>
    %c0_21 = arith.constant 0 : index
    %c3_22 = arith.constant 3 : index
    %c0_23 = arith.constant 0 : index
    %c0_24 = arith.constant 0 : index
    %24 = vector.load %arg2[%c0_21, %c3_22, %c0_23, %c0_24] : memref<1x4x2x128xf32, #tpu.memory_space<vmem>>, vector<1x1x2x128xf32>
    %25 = vector.shape_cast %24 : vector<1x1x2x128xf32> to vector<2x128xf32>
    %26 = vector.broadcast %23 : f32 to vector<2x128xf32>
    %27 = arith.mulf %26, %25 : vector<2x128xf32>
    %28 = arith.addf %22, %27 : vector<2x128xf32>
    %c0_25 = arith.constant 0 : index
    %c0_26 = arith.constant 0 : index
    %c0_27 = arith.constant 0 : index
    %c0_28 = arith.constant 0 : index
    %29 = vector.load %arg5[%c0_25, %c0_26, %c0_27, %c0_28] : memref<1x4x2x128xf32, #tpu.memory_space<vmem>>, vector<1x1x2x128xf32>
    %30 = vector.shape_cast %29 : vector<1x1x2x128xf32> to vector<2x128xf32>
    %31 = vector.shape_cast %28 : vector<2x128xf32> to vector<1x1x2x128xf32>
    tpu.vector_store %arg5[%c0_25, %c0_26, %c0_27, %c0_28], %31 {strides = array<i32>} : memref<1x4x2x128xf32, #tpu.memory_space<vmem>>, vector<1x1x2x128xf32>,
    %c0_29 = arith.constant 0 : index
    %c1_30 = arith.constant 1 : index
    %c0_31 = arith.constant 0 : index
    %c0_32 = arith.constant 0 : index
    %32 = vector.load %arg2[%c0_29, %c1_30, %c0_31, %c0_32] : memref<1x4x2x128xf32, #tpu.memory_space<vmem>>, vector<1x1x2x128xf32>
    %33 = vector.shape_cast %32 : vector<1x1x2x128xf32> to vector<2x128xf32>
    %c1_33 = arith.constant 1 : index
    %34 = memref.load %arg4[%c1_33] : memref<4xf32, #tpu.memory_space<smem>>
    %35 = vector.broadcast %34 : f32 to vector<2x128xf32>
    %36 = arith.addf %33, %35 : vector<2x128xf32>
    %c1_34 = arith.constant 1 : index
    %c0_35 = arith.constant 0 : index
    %37 = memref.load %arg3[%c1_34, %c0_35] : memref<4x4xf32, #tpu.memory_space<smem>>
    %c0_36 = arith.constant 0 : index
    %c0_37 = arith.constant 0 : index
    %c0_38 = arith.constant 0 : index
    %c0_39 = arith.constant 0 : index
    %38 = vector.load %arg2[%c0_36, %c0_37, %c0_38, %c0_39] : memref<1x4x2x128xf32, #tpu.memory_space<vmem>>, vector<1x1x2x128xf32>
    %39 = vector.shape_cast %38 : vector<1x1x2x128xf32> to vector<2x128xf32>
    %40 = vector.broadcast %37 : f32 to vector<2x128xf32>
    %41 = arith.mulf %40, %39 : vector<2x128xf32>
    %42 = arith.addf %36, %41 : vector<2x128xf32>
    %c1_40 = arith.constant 1 : index
    %c1_41 = arith.constant 1 : index
    %43 = memref.load %arg3[%c1_40, %c1_41] : memref<4x4xf32, #tpu.memory_space<smem>>
    %c0_42 = arith.constant 0 : index
    %c1_43 = arith.constant 1 : index
    %c0_44 = arith.constant 0 : index
    %c0_45 = arith.constant 0 : index
    %44 = vector.load %arg2[%c0_42, %c1_43, %c0_44, %c0_45] : memref<1x4x2x128xf32, #tpu.memory_space<vmem>>, vector<1x1x2x128xf32>
    %45 = vector.shape_cast %44 : vector<1x1x2x128xf32> to vector<2x128xf32>
    %46 = vector.broadcast %43 : f32 to vector<2x128xf32>
    %47 = arith.mulf %46, %45 : vector<2x128xf32>
    %48 = arith.addf %42, %47 : vector<2x128xf32>
    %c1_46 = arith.constant 1 : index
    %c2_47 = arith.constant 2 : index
    %49 = memref.load %arg3[%c1_46, %c2_47] : memref<4x4xf32, #tpu.memory_space<smem>>
    %c0_48 = arith.constant 0 : index
    %c2_49 = arith.constant 2 : index
    %c0_50 = arith.constant 0 : index
    %c0_51 = arith.constant 0 : index
    %50 = vector.load %arg2[%c0_48, %c2_49, %c0_50, %c0_51] : memref<1x4x2x128xf32, #tpu.memory_space<vmem>>, vector<1x1x2x128xf32>
    %51 = vector.shape_cast %50 : vector<1x1x2x128xf32> to vector<2x128xf32>
    %52 = vector.broadcast %49 : f32 to vector<2x128xf32>
    %53 = arith.mulf %52, %51 : vector<2x128xf32>
    %54 = arith.addf %48, %53 : vector<2x128xf32>
    %c1_52 = arith.constant 1 : index
    %c3_53 = arith.constant 3 : index
    %55 = memref.load %arg3[%c1_52, %c3_53] : memref<4x4xf32, #tpu.memory_space<smem>>
    %c0_54 = arith.constant 0 : index
    %c3_55 = arith.constant 3 : index
    %c0_56 = arith.constant 0 : index
    %c0_57 = arith.constant 0 : index
    %56 = vector.load %arg2[%c0_54, %c3_55, %c0_56, %c0_57] : memref<1x4x2x128xf32, #tpu.memory_space<vmem>>, vector<1x1x2x128xf32>
    %57 = vector.shape_cast %56 : vector<1x1x2x128xf32> to vector<2x128xf32>
    %58 = vector.broadcast %55 : f32 to vector<2x128xf32>
    %59 = arith.mulf %58, %57 : vector<2x128xf32>
    %60 = arith.addf %54, %59 : vector<2x128xf32>
    %c0_58 = arith.constant 0 : index
    %c1_59 = arith.constant 1 : index
    %c0_60 = arith.constant 0 : index
    %c0_61 = arith.constant 0 : index
    %61 = vector.load %arg5[%c0_58, %c1_59, %c0_60, %c0_61] : memref<1x4x2x128xf32, #tpu.memory_space<vmem>>, vector<1x1x2x128xf32>
    %62 = vector.shape_cast %61 : vector<1x1x2x128xf32> to vector<2x128xf32>
    %63 = vector.shape_cast %60 : vector<2x128xf32> to vector<1x1x2x128xf32>
    tpu.vector_store %arg5[%c0_58, %c1_59, %c0_60, %c0_61], %63 {strides = array<i32>} : memref<1x4x2x128xf32, #tpu.memory_space<vmem>>, vector<1x1x2x128xf32>,
    %c0_62 = arith.constant 0 : index
    %c2_63 = arith.constant 2 : index
    %c0_64 = arith.constant 0 : index
    %c0_65 = arith.constant 0 : index
    %64 = vector.load %arg2[%c0_62, %c2_63, %c0_64, %c0_65] : memref<1x4x2x128xf32, #tpu.memory_space<vmem>>, vector<1x1x2x128xf32>
    %65 = vector.shape_cast %64 : vector<1x1x2x128xf32> to vector<2x128xf32>
    %c2_66 = arith.constant 2 : index
    %66 = memref.load %arg4[%c2_66] : memref<4xf32, #tpu.memory_space<smem>>
    %67 = vector.broadcast %66 : f32 to vector<2x128xf32>
    %68 = arith.addf %65, %67 : vector<2x128xf32>
    %c2_67 = arith.constant 2 : index
    %c0_68 = arith.constant 0 : index
    %69 = memref.load %arg3[%c2_67, %c0_68] : memref<4x4xf32, #tpu.memory_space<smem>>
    %c0_69 = arith.constant 0 : index
    %c0_70 = arith.constant 0 : index
    %c0_71 = arith.constant 0 : index
    %c0_72 = arith.constant 0 : index
    %70 = vector.load %arg2[%c0_69, %c0_70, %c0_71, %c0_72] : memref<1x4x2x128xf32, #tpu.memory_space<vmem>>, vector<1x1x2x128xf32>
    %71 = vector.shape_cast %70 : vector<1x1x2x128xf32> to vector<2x128xf32>
    %72 = vector.broadcast %69 : f32 to vector<2x128xf32>
    %73 = arith.mulf %72, %71 : vector<2x128xf32>
    %74 = arith.addf %68, %73 : vector<2x128xf32>
    %c2_73 = arith.constant 2 : index
    %c1_74 = arith.constant 1 : index
    %75 = memref.load %arg3[%c2_73, %c1_74] : memref<4x4xf32, #tpu.memory_space<smem>>
    %c0_75 = arith.constant 0 : index
    %c1_76 = arith.constant 1 : index
    %c0_77 = arith.constant 0 : index
    %c0_78 = arith.constant 0 : index
    %76 = vector.load %arg2[%c0_75, %c1_76, %c0_77, %c0_78] : memref<1x4x2x128xf32, #tpu.memory_space<vmem>>, vector<1x1x2x128xf32>
    %77 = vector.shape_cast %76 : vector<1x1x2x128xf32> to vector<2x128xf32>
    %78 = vector.broadcast %75 : f32 to vector<2x128xf32>
    %79 = arith.mulf %78, %77 : vector<2x128xf32>
    %80 = arith.addf %74, %79 : vector<2x128xf32>
    %c2_79 = arith.constant 2 : index
    %c2_80 = arith.constant 2 : index
    %81 = memref.load %arg3[%c2_79, %c2_80] : memref<4x4xf32, #tpu.memory_space<smem>>
    %c0_81 = arith.constant 0 : index
    %c2_82 = arith.constant 2 : index
    %c0_83 = arith.constant 0 : index
    %c0_84 = arith.constant 0 : index
    %82 = vector.load %arg2[%c0_81, %c2_82, %c0_83, %c0_84] : memref<1x4x2x128xf32, #tpu.memory_space<vmem>>, vector<1x1x2x128xf32>
    %83 = vector.shape_cast %82 : vector<1x1x2x128xf32> to vector<2x128xf32>
    %84 = vector.broadcast %81 : f32 to vector<2x128xf32>
    %85 = arith.mulf %84, %83 : vector<2x128xf32>
    %86 = arith.addf %80, %85 : vector<2x128xf32>
    %c2_85 = arith.constant 2 : index
    %c3_86 = arith.constant 3 : index
    %87 = memref.load %arg3[%c2_85, %c3_86] : memref<4x4xf32, #tpu.memory_space<smem>>
    %c0_87 = arith.constant 0 : index
    %c3_88 = arith.constant 3 : index
    %c0_89 = arith.constant 0 : index
    %c0_90 = arith.constant 0 : index
    %88 = vector.load %arg2[%c0_87, %c3_88, %c0_89, %c0_90] : memref<1x4x2x128xf32, #tpu.memory_space<vmem>>, vector<1x1x2x128xf32>
    %89 = vector.shape_cast %88 : vector<1x1x2x128xf32> to vector<2x128xf32>
    %90 = vector.broadcast %87 : f32 to vector<2x128xf32>
    %91 = arith.mulf %90, %89 : vector<2x128xf32>
    %92 = arith.addf %86, %91 : vector<2x128xf32>
    %c0_91 = arith.constant 0 : index
    %c2_92 = arith.constant 2 : index
    %c0_93 = arith.constant 0 : index
    %c0_94 = arith.constant 0 : index
    %93 = vector.load %arg5[%c0_91, %c2_92, %c0_93, %c0_94] : memref<1x4x2x128xf32, #tpu.memory_space<vmem>>, vector<1x1x2x128xf32>
    %94 = vector.shape_cast %93 : vector<1x1x2x128xf32> to vector<2x128xf32>
    %95 = vector.shape_cast %92 : vector<2x128xf32> to vector<1x1x2x128xf32>
    tpu.vector_store %arg5[%c0_91, %c2_92, %c0_93, %c0_94], %95 {strides = array<i32>} : memref<1x4x2x128xf32, #tpu.memory_space<vmem>>, vector<1x1x2x128xf32>,
    %c0_95 = arith.constant 0 : index
    %c3_96 = arith.constant 3 : index
    %c0_97 = arith.constant 0 : index
    %c0_98 = arith.constant 0 : index
    %96 = vector.load %arg2[%c0_95, %c3_96, %c0_97, %c0_98] : memref<1x4x2x128xf32, #tpu.memory_space<vmem>>, vector<1x1x2x128xf32>
    %97 = vector.shape_cast %96 : vector<1x1x2x128xf32> to vector<2x128xf32>
    %c3_99 = arith.constant 3 : index
    %98 = memref.load %arg4[%c3_99] : memref<4xf32, #tpu.memory_space<smem>>
    %99 = vector.broadcast %98 : f32 to vector<2x128xf32>
    %100 = arith.addf %97, %99 : vector<2x128xf32>
    %c3_100 = arith.constant 3 : index
    %c0_101 = arith.constant 0 : index
    %101 = memref.load %arg3[%c3_100, %c0_101] : memref<4x4xf32, #tpu.memory_space<smem>>
    %c0_102 = arith.constant 0 : index
    %c0_103 = arith.constant 0 : index
    %c0_104 = arith.constant 0 : index
    %c0_105 = arith.constant 0 : index
    %102 = vector.load %arg2[%c0_102, %c0_103, %c0_104, %c0_105] : memref<1x4x2x128xf32, #tpu.memory_space<vmem>>, vector<1x1x2x128xf32>
    %103 = vector.shape_cast %102 : vector<1x1x2x128xf32> to vector<2x128xf32>
    %104 = vector.broadcast %101 : f32 to vector<2x128xf32>
    %105 = arith.mulf %104, %103 : vector<2x128xf32>
    %106 = arith.addf %100, %105 : vector<2x128xf32>
    %c3_106 = arith.constant 3 : index
    %c1_107 = arith.constant 1 : index
    %107 = memref.load %arg3[%c3_106, %c1_107] : memref<4x4xf32, #tpu.memory_space<smem>>
    %c0_108 = arith.constant 0 : index
    %c1_109 = arith.constant 1 : index
    %c0_110 = arith.constant 0 : index
    %c0_111 = arith.constant 0 : index
    %108 = vector.load %arg2[%c0_108, %c1_109, %c0_110, %c0_111] : memref<1x4x2x128xf32, #tpu.memory_space<vmem>>, vector<1x1x2x128xf32>
    %109 = vector.shape_cast %108 : vector<1x1x2x128xf32> to vector<2x128xf32>
    %110 = vector.broadcast %107 : f32 to vector<2x128xf32>
    %111 = arith.mulf %110, %109 : vector<2x128xf32>
    %112 = arith.addf %106, %111 : vector<2x128xf32>
    %c3_112 = arith.constant 3 : index
    %c2_113 = arith.constant 2 : index
    %113 = memref.load %arg3[%c3_112, %c2_113] : memref<4x4xf32, #tpu.memory_space<smem>>
    %c0_114 = arith.constant 0 : index
    %c2_115 = arith.constant 2 : index
    %c0_116 = arith.constant 0 : index
    %c0_117 = arith.constant 0 : index
    %114 = vector.load %arg2[%c0_114, %c2_115, %c0_116, %c0_117] : memref<1x4x2x128xf32, #tpu.memory_space<vmem>>, vector<1x1x2x128xf32>
    %115 = vector.shape_cast %114 : vector<1x1x2x128xf32> to vector<2x128xf32>
    %116 = vector.broadcast %113 : f32 to vector<2x128xf32>
    %117 = arith.mulf %116, %115 : vector<2x128xf32>
    %118 = arith.addf %112, %117 : vector<2x128xf32>
    %c3_118 = arith.constant 3 : index
    %c3_119 = arith.constant 3 : index
    %119 = memref.load %arg3[%c3_118, %c3_119] : memref<4x4xf32, #tpu.memory_space<smem>>
    %c0_120 = arith.constant 0 : index
    %c3_121 = arith.constant 3 : index
    %c0_122 = arith.constant 0 : index
    %c0_123 = arith.constant 0 : index
    %120 = vector.load %arg2[%c0_120, %c3_121, %c0_122, %c0_123] : memref<1x4x2x128xf32, #tpu.memory_space<vmem>>, vector<1x1x2x128xf32>
    %121 = vector.shape_cast %120 : vector<1x1x2x128xf32> to vector<2x128xf32>
    %122 = vector.broadcast %119 : f32 to vector<2x128xf32>
    %123 = arith.mulf %122, %121 : vector<2x128xf32>
    %124 = arith.addf %118, %123 : vector<2x128xf32>
    %c0_124 = arith.constant 0 : index
    %c3_125 = arith.constant 3 : index
    %c0_126 = arith.constant 0 : index
    %c0_127 = arith.constant 0 : index
    %125 = vector.load %arg5[%c0_124, %c3_125, %c0_126, %c0_127] : memref<1x4x2x128xf32, #tpu.memory_space<vmem>>, vector<1x1x2x128xf32>
    %126 = vector.shape_cast %125 : vector<1x1x2x128xf32> to vector<2x128xf32>
    %127 = vector.shape_cast %124 : vector<2x128xf32> to vector<1x1x2x128xf32>
    tpu.vector_store %arg5[%c0_124, %c3_125, %c0_126, %c0_127], %127 {strides = array<i32>} : memref<1x4x2x128xf32, #tpu.memory_space<vmem>>, vector<1x1x2x128xf32>,
    return
  }
  func.func @transform_0(%arg0: i32, %arg1: i32) -> (i32, i32, i32, i32) {
    %c0_i32 = arith.constant 0 : i32
    %c0_i32_0 = arith.constant 0 : i32
    %c0_i32_1 = arith.constant 0 : i32
    return %arg0, %c0_i32, %arg1, %c0_i32_0 : i32, i32, i32, i32
  }
  func.func @transform_1(%arg0: i32, %arg1: i32) -> (i32, i32) {
    %c0_i32 = arith.constant 0 : i32
    %c0_i32_0 = arith.constant 0 : i32
    %c0_i32_1 = arith.constant 0 : i32
    return %c0_i32, %c0_i32_0 : i32, i32
  }
  func.func @transform_2(%arg0: i32, %arg1: i32) -> i32 {
    %c0_i32 = arith.constant 0 : i32
    %c0_i32_0 = arith.constant 0 : i32
    return %c0_i32 : i32
  }
  func.func @transform_3(%arg0: i32, %arg1: i32) -> (i32, i32, i32, i32) {
    %c0_i32 = arith.constant 0 : i32
    %c0_i32_0 = arith.constant 0 : i32
    %c0_i32_1 = arith.constant 0 : i32
    return %arg0, %c0_i32, %arg1, %c0_i32_0 : i32, i32, i32, i32
  }
}

</mosaic_0001>

<bundles_post_ra>
// kernel: residual_forward.1
= control target key start
LH: loop header
LB: loop body
LE: loop exit
PB: predicated region body
PF: predicated region fallthrough
CT: control target
= control target key end

     0   :  { %8 = vsyncpa [#allocation3], 0  ;;  %s711_s0 = inlined_call_operand.vmem [shape: f32[2,4,2,128], index: 0, kind: input, shape index: {}]   ;;  %s712_s1 = inlined_call_operand.vmem [shape: f32[4,4], index: 1, kind: input, shape index: {}]   ;;  %s713_s2 = inlined_call_operand.vmem [shape: f32[4], index: 2, kind: input, shape index: {}]   ;;  %s714_s3 = inlined_call_operand.vmem [shape: f32[2,4,2,128], index: 3, kind: output, shape index: {}]  }
   0x1   :  { %9 = vsyncpa [#allocation5], 0  ;;  %s616_s12 = smov 0   ;;  %s618_s13 = smov 0  }
   0x2   :  { %s620_s14 = smov 0  }
   0x3 LB: > { %s437_s15 = sadd.s32 4294967295, %s592_s14   ;;  %s27_s16 = sadd.s32 1, %s588_s13  ;;  %s592_s14 = sphi %s620_s14, %s15_s14   ;;  %s588_s13 = sphi %s618_s13, %s717_s13   ;;  %s584_s12 = sphi %s616_s12, %s716_s12  }
   0x4   : > { %p29_p0 = scmp.ge.s32.totalorder %s27_s16, 2  ;;  %p439_p1 = scmp.ge.s32.totalorder %s592_s14, 1 }
   0x5   : > { %p130_p2 = scmp.lt.s32.totalorder %s592_s14, 3  ;;  %p637_p4 = scmp.eq.s32.totalorder %s437_s15, 0 }
   0x6   : > { %s719_s16 = smov (%p29_p0, %s27_s16), 0  ;;  %s142_s20 = sshll.u32 %s712_s1, 4  ;;  %s143_s20 = int_to_ptr.vmem [resolvable:$true] %s142_s20 }
   0x7   : > { %p131_p3 = pnand %p439_p1, %p130_p2  ;;  %s152_s23 = sshll.u32 %s713_s2, 4  ;;  %s153_s23 = int_to_ptr.vmem [resolvable:$true] %s152_s23 }
   0x8   : > { %s594_s24 = smov [#allocation2]   ;;  %s595_s25 = smov [#allocation4]  }
   0x9   : > { %p495_p5 = pneg %p131_p3 }
   0xa   : > { %176 = sbr.rel (%p131_p3) target bundleno = 55 (0x37), region = 32 }
   0xb   : > { %p496_p6 = pnand %p637_p4, %p495_p5 }
   0xd   : > { %498 = dma.vmem_to_smem (!%p496_p6), %s143_s20, 64, %s594_s24, [#allocation3]  }
   0xe   : > { %501 = dma.vmem_to_smem (!%p496_p6), %s153_s23, 16, %s595_s25, [#allocation5]  }
   0xf   : > { %575 = dma.done.wait (%p637_p4), [#allocation3], 64  }
  0x10   : > { %577 = vsyncadd (%p637_p4), [#allocation3], 4294967232 }
  0x11   : > { %579 = dma.done.wait (%p637_p4), [#allocation5], 16  }
  0x12   : > { %581 = vsyncadd (%p637_p4), [#allocation5], 4294967280 }
  0x13   : > { %188 = sfence }
  0x14   : > { %p213_p7 = scmp.lt.s32.totalorder %s584_s12, 1  ;;  %s230_s26 = sld [smem:[#allocation4]] }
  0x15   : > { %s233_s27 = sld [smem:[#allocation2]] }
  0x16   : > { %s721_s12 = smov (!%p213_p7, %s584_s12), 1  ;;  %s450_s28 = sld [smem:[#allocation2 + $0x1]] }
  0x17   : > { %s485_s29 = sshll.u32 %s721_s12, 3  ;;  %s452_s30 = sld [smem:[#allocation2 + $0x2]] }
  0x18   : > { %s667_s6 = scalar_lea.vmem %s711_s0, %s485_s29  ;;  %s454_s7 = sld [smem:[#allocation2 + $0x3]] }
  0x19   : > { %v229_v0 = vld [vmem:[%s667_s6] sm:$0x3]  ;;  %v451_v4 = vld [vmem:[%s667_s6 + $0x2] sm:$0x3]  ;;  %v453_v6 = vld [vmem:[%s667_s6 + $0x4] sm:$0x3]  ;;  %s682_s21 = scalar_lea.vmem %s714_s3, %s485_s29 }
  0x1a   : > { %v231_v1 = vstv %s230_s26  ;;  %s457_s8 = sld [smem:[#allocation4 + $0x1]]  ;;  %v455_v12 = vld [vmem:[%s667_s6 + $0x6] sm:$0x3]  ;;  %v456_v14 = vld [vmem:[%s667_s6 + $0x2] sm:$0x3] }
  0x1b   : > { %v232_v2 = vadd.f32 %v231_v1, %v229_v0  ;;  %v234_v3 = vstv %s233_s27  ;;  %s458_s9 = sld [smem:[#allocation2 + $0x80]]  ;;  %v261_v16 = vld [vmem:[%s667_s6] sm:$0x3]  ;;  %v461_v22 = vld [vmem:[%s667_s6 + $0x4] sm:$0x3] }
  0x1c   : > { %v235_v5 = vmul.f32 %v234_v3, %v229_v0  ;;  %v240_v7 = vstv %s450_s28  ;;  %s459_s10 = sld [smem:[#allocation2 + $0x81]]  ;;  %v463_v28 = vld [vmem:[%s667_s6 + $0x6] sm:$0x3]  ;;  %v465_v29 = vld [vmem:[%s667_s6 + $0x4] sm:$0x3] }
  0x1d   : > { %v241_v9 = vmul.f32 %v451_v4, %v240_v7  ;;  %v246_v10 = vstv %s452_s30  ;;  %s460_s11 = sld [smem:[#allocation2 + $0x82]]  ;;  %v286_v33 = vld [vmem:[%s667_s6] sm:$0x3]  ;;  %v469_v35 = vld [vmem:[%s667_s6 + $0x2] sm:$0x3] }
  0x1e   : > { %v236_v8 = vadd.f32 %v235_v5, %v232_v2  ;;  %v247_v11 = vmul.f32 %v453_v6, %v246_v10  ;;  %s674_s15 = sld [smem:[#allocation2 + $0x83]]  ;;  %v252_v15 = vstv %s454_s7  ;;  %v472_v45 = vld [vmem:[%s667_s6 + $0x6] sm:$0x3]  ;;  %v311_v50 = vld [vmem:[%s667_s6] sm:$0x3] }
  0x1f   : > { %s466_s17 = sld [smem:[#allocation4 + $0x2]]  ;;  %v253_v18 = vmul.f32 %v455_v12, %v252_v15  ;;  %v474_v46 = vld [vmem:[%s667_s6 + $0x6] sm:$0x3]  ;;  %v478_v53 = vld [vmem:[%s667_s6 + $0x2] sm:$0x3] }
  0x20   : > { %v242_v13 = vadd.f32 %v241_v9, %v236_v8  ;;  %v258_v19 = vstv %s457_s8  ;;  %s467_s18 = sld [smem:[#allocation2 + $0x100]]  ;;  %v480_v58 = vld [vmem:[%s667_s6 + $0x4] sm:$0x3] }
  0x21   : > { %v259_v20 = vadd.f32 %v456_v14, %v258_v19  ;;  %v262_v21 = vstv %s458_s9  ;;  %s468_s22 = sld [smem:[#allocation2 + $0x101]] }
  0x22   : > { %v248_v17 = vadd.f32 %v247_v11, %v242_v13  ;;  %v263_v24 = vmul.f32 %v262_v21, %v261_v16  ;;  %v266_v25 = vstv %s459_s10  ;;  %s470_s23 = sld [smem:[#allocation2 + $0x102]] }
  0x23   : > { %v267_v26 = vmul.f32 %v456_v14, %v266_v25  ;;  %v271_v27 = vstv %s460_s11  ;;  %s687_s12 = sld [smem:[#allocation2 + $0x103]] }
  0x24   : > { %v254_v23 = vadd.f32 %v253_v18, %v248_v17  ;;  %v264_v30 = vadd.f32 %v263_v24, %v259_v20  ;;  %v272_v31 = vmul.f32 %v461_v22, %v271_v27  ;;  %v276_v32 = vstv %s674_s15  ;;  %s475_s24 = sld [smem:[#allocation4 + $0x3]] }
  0x25   : > { %v283_v34 = vstv %s466_s17  ;;  %s476_s25 = sld [smem:[#allocation2 + $0x180]]  ;;  %v277_v37 = vmul.f32 %v463_v28, %v276_v32 }
  0x26   : > { %255 = vst [vmem:[%s682_s21] sm:$0x3] %v254_v23  ;;  %v268_v36 = vadd.f32 %v267_v26, %v264_v30  ;;  %v284_v38 = vadd.f32 %v465_v29, %v283_v34  ;;  %v287_v39 = vstv %s467_s18  ;;  %s477_s26 = sld [smem:[#allocation2 + $0x181]] }
  0x27   : > { %v288_v40 = vmul.f32 %v287_v39, %v286_v33  ;;  %v292_v41 = vstv %s468_s22  ;;  %s479_s27 = sld [smem:[#allocation2 + $0x182]] }
  0x28   : > { %v273_v42 = vadd.f32 %v272_v31, %v268_v36  ;;  %v293_v43 = vmul.f32 %v469_v35, %v292_v41  ;;  %v296_v44 = vstv %s470_s23  ;;  %s481_s28 = sld [smem:[#allocation2 + $0x183]] }
  0x29   : > { %v289_v47 = vadd.f32 %v288_v40, %v284_v38  ;;  %v297_v48 = vmul.f32 %v465_v29, %v296_v44  ;;  %v301_v49 = vstv %s687_s12 }
  0x2a   : > { %v278_v51 = vadd.f32 %v277_v37, %v273_v42  ;;  %v308_v52 = vstv %s475_s24  ;;  %v302_v55 = vmul.f32 %v472_v45, %v301_v49 }
  0x2b   : > { %v294_v54 = vadd.f32 %v293_v43, %v289_v47  ;;  %v309_v56 = vadd.f32 %v474_v46, %v308_v52  ;;  %v312_v57 = vstv %s476_s25 }
  0x2c   : > { %464 = vst [vmem:[%s682_s21 + $0x2] sm:$0x3] %v278_v51  ;;  %v313_v59 = vmul.f32 %v312_v57, %v311_v50  ;;  %v317_v60 = vstv %s477_s26 }
  0x2d   : > { %v298_v61 = vadd.f32 %v297_v48, %v294_v54  ;;  %v318_v62 = vmul.f32 %v478_v53, %v317_v60  ;;  %v322_v63 = vstv %s479_s27 }
  0x2e   : > { %v314_v0 = vadd.f32 %v313_v59, %v309_v56  ;;  %v323_v1 = vmul.f32 %v480_v58, %v322_v63  ;;  %v326_v2 = vstv %s481_s28 }
  0x2f   : > { %v303_v3 = vadd.f32 %v302_v55, %v298_v61  ;;  %v327_v5 = vmul.f32 %v474_v46, %v326_v2 }
  0x30   : > { %v319_v4 = vadd.f32 %v318_v62, %v314_v0 }
  0x31   : > { %473 = vst [vmem:[%s682_s21 + $0x4] sm:$0x3] %v303_v3 }
  0x32   : > { %v324_v6 = vadd.f32 %v323_v1, %v319_v4 }
  0x34   : > { %v328_v7 = vadd.f32 %v327_v5, %v324_v6 }
  0x36   : > { %482 = vst [vmem:[%s682_s21 + $0x6] sm:$0x3] %v328_v7 }
  0x37 PF: > { %s15_s14 = sadd.s32 1, %s592_s14   ;;  %s716_s12 = smov %s588_s13 }
  0x38   : > { %p12_p8 = scmp.ge.s32.totalorder %s15_s14, 4   ;;  %s717_s13 = smov %s719_s16 }
  0x3a   :  { %14 = sbr.rel (!%p12_p8) target bundleno = 3 (0x3), region = 77 }
  0x3f   :  { %358 = vsyncpa [#allocation3], 1 }
  0x40   :  { %360 = vsyncpa [#allocation3 + $0x1], 1 }
  0x41   :  { %361 = vsyncpa [#allocation5], 1 }

</bundles_post_ra>
